<compile_context>
chip_gen: v5e
topology: v5e:2x2
jax: 0.10.0
libtpu: 0.0.40
codegen_flags: <defaults>
</compile_context>

<pallas_src>
import functools
import math

import jax
import jax.numpy as jnp
from jax.experimental import pallas as pl
from jax.experimental.pallas import tpu as pltpu


def _round_up(a, b):
    return ((a + b - 1) // b) * b


# ----------------------------- Pallas kernel -------------------------------
def _sagpool_score_kernel(p_ref, at_ref, b_ref, score_ref, *, tk):
    """One (j, k) grid step of   score^T = p @ A_norm^T + b,  p = (x @ W)^T.

    p_ref     : [8, n_pad]  projected features (row 0 real, rows 1..7 zero),
                            fully VMEM-resident                        (bf16)
    at_ref    : [TK, TJ]    A_norm^T tile, AT[k, j] = A_norm[j, k]     (bf16)
    b_ref     : [1, 1]      GCN bias                                   (SMEM)
    score_ref : [8, TJ]     lane-dense score slab (f32), resident across k;
                            row 0 is the score, accumulated over k.
    """
    @pl.when(pl.program_id(1) == 0)
    def _init():
        # Initialize the resident output tile with the GCN bias.
        score_ref[...] = jnp.full(score_ref.shape, b_ref[0, 0], score_ref.dtype)

    # Slice the resident p slab at this reduction block (aligned dynamic slice).
    k0 = pl.multiple_of(pl.program_id(1) * tk, tk)
    p_tile = p_ref[:, pl.ds(k0, tk)]                         # [8, TK] bf16

    # Single MXU op per step: bf16 operands, f32 accumulation.
    score_ref[...] += jnp.dot(p_tile, at_ref[...],
                              preferred_element_type=jnp.float32)


# --------------------------- adjacency (wrapper) ----------------------------
def build_gcn_adjacency_t(edge_index, num_nodes, n_pad):
    """D^{-1/2}(A+I)D^{-1/2}, built TRANSPOSED, padded to n_pad and cast to
    bf16 in one shot (A[target, source] convention, as in PyG gcn_norm)."""
    # TODO(synk): for very large / sparse graphs replace this dense O(N^2) path
    # with an edge-wise segment-sum kernel (scalar-prefetched edge offsets).
    src = edge_index[0].astype(jnp.int32)
    dst = edge_index[1].astype(jnp.int32)
    # A[dst, src] += 1  <=>  A^T[src, dst] += 1 : build A^T directly, padded.
    at = jnp.zeros((n_pad, n_pad), jnp.float32).at[src, dst].add(1.0)
    diag = jnp.arange(num_nodes, dtype=jnp.int32)
    at = at.at[diag, diag].add(1.0)                          # add self loops
    deg = at.sum(axis=0)                                     # deg[j] = sum_k A[j,k]
    dinv = jnp.where(deg > 0, jax.lax.rsqrt(deg), 0.0)       # 0 on padded/isolated
    # (D A D)^T = D A^T D ; scaling and the bf16 cast fuse into one pass.
    return (dinv[:, None] * at * dinv[None, :]).astype(jnp.bfloat16)


# ------------------------------ score (Pallas) -------------------------------
def sagpool_scores(x, edge_index, w, b, *, tile=512, single_tile_max=1024):
    """GCN score for every node via the Pallas kernel.  Returns score [N] f32."""
    N, C = x.shape

    # Node tile selection:
    #  * small graphs -> one (1,1) grid tile (single DMA + matmul, no per-step
    #    overhead);
    #  * large graphs -> TJ = TK = tile (default 512, capped at 1024 so
    #    n_pad/TJ >= 2 keeps the 'parallel' j-axis shardable on v7x megacore
    #    and the double-buffered bf16 A^T tile stays under the v5e VMEM default).
    tile = _round_up(max(128, min(int(tile), 1024)), 128)
    if N <= single_tile_max:
        n_pad = _round_up(N, 128)
        tj = tk = n_pad
    else:
        tj = tk = tile
        n_pad = _round_up(N, tile)

    # Normalized adjacency, already transposed / padded / bf16 (single pass).
    at = build_gcn_adjacency_t(edge_index, N, n_pad)         # [n_pad, n_pad] bf16

    # Precompute p = (x @ W)^T in f32 (trivial), laid out as an 8-sublane slab
    # (row 0 real) so both matmul operands have well-formed (8, 128) tiles.
    w_col = jnp.asarray(w, jnp.float32).reshape(C, 1)
    p_row = (x.astype(jnp.float32) @ w_col).reshape(-1)      # [N] f32
    p = jnp.zeros((8, n_pad), jnp.bfloat16).at[0, :N].set(
        p_row.astype(jnp.bfloat16))
    b_sc = jnp.asarray(b, jnp.float32).reshape(1, 1)

    grid = (n_pad // tj, n_pad // tk)                        # (out tiles, reduction)

    # Bandwidth-bound: bytes ~= one bf16 pass over A^T (+ tiny p / score slab).
    cost = pl.CostEstimate(
        flops=2 * 8 * n_pad * n_pad,
        transcendentals=0,
        bytes_accessed=2 * n_pad * n_pad + 2 * 8 * n_pad + 4 * 8 * n_pad)

    # Raise scoped VMEM only if an (unusually) large tile would blow the v5e
    # 16 MiB default: 2x double-buffered A^T tile + resident p + output slab.
    working = 2 * (tk * tj * 2) + 8 * n_pad * 2 + 8 * tj * 4
    vmem_limit = None if working < (12 << 20) else working + (4 << 20)

    score_slab = pl.pallas_call(
        functools.partial(_sagpool_score_kernel, tk=tk),
        out_shape=jax.ShapeDtypeStruct((8, n_pad), jnp.float32),
        grid_spec=pltpu.PrefetchScalarGridSpec(
            num_scalar_prefetch=0,
            grid=grid,
            in_specs=[
                pl.BlockSpec((8, n_pad), lambda j, k: (0, 0)),       # p resident
                # A^T tile stream; at TJ>=512 bursts are >=1 KiB so default
                # double-buffering suffices (pl.Buffered(3) not needed).
                pl.BlockSpec((tk, tj), lambda j, k: (k, j)),
                pl.BlockSpec(memory_space=pltpu.MemorySpace.SMEM),   # bias
            ],
            out_specs=pl.BlockSpec((8, tj), lambda j, k: (0, j)),
        ),
        compiler_params=pltpu.CompilerParams(
            # node-tile axis parallel (2 TensorCores on v7x), reduction arbitrary
            dimension_semantics=("parallel", "arbitrary"),
            vmem_limit_bytes=vmem_limit),
        cost_estimate=cost,
    )(p, at, b_sc)
    return score_slab[0, :N]


# ------------------------------ JAX glue ------------------------------------
def filter_adj(edge_index, edge_attr, perm, num_nodes):
    """Keep only edges between selected nodes, remap indices (filter_adj)."""
    # TODO(synk): boolean-mask indexing gives data-dependent shapes; a padded /
    # sentinel-edge formulation is needed if this path is ever jitted.
    k = perm.shape[0]
    mask = jnp.full((num_nodes,), -1, jnp.int32).at[perm].set(
        jnp.arange(k, dtype=jnp.int32))
    row, col = edge_index[0], edge_index[1]
    keep = (mask[row] >= 0) & (mask[col] >= 0)
    new_edge_index = jnp.stack([mask[row][keep], mask[col][keep]])
    new_edge_attr = None if edge_attr is None else edge_attr[keep]
    return new_edge_index, new_edge_attr


def sagpool_forward(x, edge_index, w, b, ratio=0.8, edge_attr=None, batch=None,
                    tile=512):
    """SAGPool_ forward (dropout p=0.0 -> Identity, non_linearity = tanh)."""
    N = x.shape[0]
    if batch is None:
        batch = jnp.zeros((N,), jnp.int32)

    # --- hot path (GCN score) in Pallas ---
    score = sagpool_scores(x, edge_index, w, b, tile=tile)   # [N]

    # topk(score, ratio, batch): single graph (batch all zeros) -> global top-k.
    # TODO(synk): multi-graph (segment-wise) batched top-k is not implemented.
    k = int(math.ceil(ratio * N))
    _, perm = jax.lax.top_k(score, k)

    # Gate + gather only the kept rows (no full [N, C] gated writeback).
    x_out = x[perm] * jnp.tanh(score[perm])[:, None]
    batch_out = batch[perm]
    edge_index_out, edge_attr_out = filter_adj(edge_index, edge_attr, perm, N)
    return x_out, edge_index_out, edge_attr_out, batch_out, perm


# ------------------------------ main ----------------------------------------
if __name__ == "__main__":
    N = 200            # number of nodes (pads to 256)
    C = 32             # in_channels
    ratio = 0.8

    key = jax.random.PRNGKey(0)
    kx, kw = jax.random.split(key)

    # Node features [N, C]
    x = jax.random.normal(kx, (N, C), dtype=jnp.float32)

    # Undirected ring graph -> edge_index [2, 2N]
    src = jnp.arange(N, dtype=jnp.int32)
    dst = (src + 1) % N
    edge_index = jnp.stack(
        [jnp.concatenate([src, dst]), jnp.concatenate([dst, src])])

    # Deterministic GCNConv(in_channels=C, out_channels=1) parameters.
    w = (jax.random.normal(kw, (C, 1), dtype=jnp.float32)
         * (1.0 / math.sqrt(C))).astype(jnp.float32)
    b = jnp.full((1, 1), 0.1, dtype=jnp.float32)

    x_out, ei_out, ea_out, batch_out, perm = sagpool_forward(
        x, edge_index, w, b, ratio=ratio)

    jax.block_until_ready(x_out)
    jax.block_until_ready(ei_out)
    jax.block_until_ready(batch_out)
    jax.block_until_ready(perm)

    # Pure-JAX f32 reference for the score path (kernel streams bf16 A^T / p
    # with f32 accumulation -> loose tolerance).
    a = jnp.zeros((N, N), jnp.float32).at[edge_index[1], edge_index[0]].add(1.0)
    a = a + jnp.eye(N, dtype=jnp.float32)
    deg = a.sum(axis=1)
    dinv = jnp.where(deg > 0, 1.0 / jnp.sqrt(deg), 0.0)
    a_norm = dinv[:, None] * a * dinv[None, :]
    score_ref = (a_norm @ (x @ w) + b[0, 0])[:, 0]

    # Fast path: single (1, 1) grid tile (n_pad = 256).
    score_1 = sagpool_scores(x, edge_index, w, b)
    # Tiled path: force a 2x2 grid of 128-tiles to exercise the k-accumulation.
    score_2 = sagpool_scores(x, edge_index, w, b, tile=128, single_tile_max=0)
    jax.block_until_ready(score_1)
    jax.block_until_ready(score_2)

    err1 = float(jnp.max(jnp.abs(score_1 - score_ref)))
    err2 = float(jnp.max(jnp.abs(score_2 - score_ref)))
    assert jnp.allclose(score_1, score_ref, rtol=3e-2, atol=3e-2), err1
    assert jnp.allclose(score_2, score_ref, rtol=3e-2, atol=3e-2), err2

    k = int(math.ceil(ratio * N))
    assert x_out.shape == (k, C)
    assert perm.shape == (k,)
    assert batch_out.shape == (k,)
    assert ei_out.shape[0] == 2
    print("KERNEL_OK")
</pallas_src>

<mosaic_0001>
module attributes {stable_mosaic.version = 11 : i64} {
  func.func @_sagpool_score_kernel(%arg0: i32, %arg1: i32, %arg2: memref<8x256xbf16, #tpu.memory_space<vmem>>, %arg3: memref<256x256xbf16, #tpu.memory_space<vmem>>, %arg4: memref<1x1xf32, #tpu.memory_space<smem>>, %arg5: memref<8x256xf32, #tpu.memory_space<vmem>>) attributes {dimension_semantics = [#tpu.dimension_semantics<parallel>, #tpu.dimension_semantics<arbitrary>], iteration_bounds = array<i64: 1, 1>, scalar_prefetch = 0 : i64, scratch_operands = 0 : i64, tpu.core_type = #tpu.core_type<tc>, window_params = [{pipeline_mode = #tpu.pipeline_mode<synchronous>, transform_indices = @transform_0, window_bounds = array<i64: 8, 256>}, {transform_indices = @transform_1, window_bounds = array<i64: 256, 256>}, {transform_indices = @transform_2, window_bounds = array<i64: 1, 1>}, {transform_indices = @transform_3, window_bounds = array<i64: 8, 256>}]} {
    %c0_i32 = arith.constant 0 : i32
    %0 = arith.cmpi eq, %arg1, %c0_i32 : i32
    %1 = arith.extui %0 : i1 to i32
    %c0_i32_0 = arith.constant 0 : i32
    %2 = arith.cmpi ne, %1, %c0_i32_0 : i32
    scf.if %2 {
      %c0_7 = arith.constant 0 : index
      %c0_8 = arith.constant 0 : index
      %12 = memref.load %arg4[%c0_7, %c0_8] : memref<1x1xf32, #tpu.memory_space<smem>>
      %13 = vector.broadcast %12 : f32 to vector<8x256xf32>
      %c0_9 = arith.constant 0 : index
      %c0_10 = arith.constant 0 : index
      %14 = vector.load %arg5[%c0_9, %c0_10] : memref<8x256xf32, #tpu.memory_space<vmem>>, vector<8x256xf32>
      tpu.vector_store %arg5[%c0_9, %c0_10], %13 {strides = array<i32>} : memref<8x256xf32, #tpu.memory_space<vmem>>, vector<8x256xf32>,
    } else {
    }
    %c256_i32 = arith.constant 256 : i32
    %3 = arith.muli %arg1, %c256_i32 : i32
    %4 = tpu.assume_multiple %3, 256 : i32
    %c0 = arith.constant 0 : index
    %5 = arith.index_cast %4 : i32 to index
    %6 = vector.load %arg2[%c0, %5] : memref<8x256xbf16, #tpu.memory_space<vmem>>, vector<8x256xbf16>
    %c0_1 = arith.constant 0 : index
    %c0_2 = arith.constant 0 : index
    %7 = vector.load %arg5[%c0_1, %c0_2] : memref<8x256xf32, #tpu.memory_space<vmem>>, vector<8x256xf32>
    %c0_3 = arith.constant 0 : index
    %c0_4 = arith.constant 0 : index
    %8 = vector.load %arg3[%c0_3, %c0_4] : memref<256x256xbf16, #tpu.memory_space<vmem>>, vector<256x256xbf16>
    %cst = arith.constant dense<0.000000e+00> : vector<8x256xf32>
    %9 = tpu.matmul %6, %8, %cst {dimension_numbers = #tpu.dot_dimension_numbers<[1], [0], [0], [1], [0, 0, 1, 1], [], []>} : vector<8x256xbf16>, vector<256x256xbf16>, vector<8x256xf32> -> vector<8x256xf32>
    %10 = arith.addf %7, %9 : vector<8x256xf32>
    %c0_5 = arith.constant 0 : index
    %c0_6 = arith.constant 0 : index
    %11 = vector.load %arg5[%c0_5, %c0_6] : memref<8x256xf32, #tpu.memory_space<vmem>>, vector<8x256xf32>
    tpu.vector_store %arg5[%c0_5, %c0_6], %10 {strides = array<i32>} : memref<8x256xf32, #tpu.memory_space<vmem>>, vector<8x256xf32>,
    return
  }
  func.func @transform_0(%arg0: i32, %arg1: i32) -> (i32, i32) {
    %c0_i32 = arith.constant 0 : i32
    %c0_i32_0 = arith.constant 0 : i32
    %c0_i32_1 = arith.constant 0 : i32
    return %c0_i32, %c0_i32_0 : i32, i32
  }
  func.func @transform_1(%arg0: i32, %arg1: i32) -> (i32, i32) {
    %c0_i32 = arith.constant 0 : i32
    return %arg1, %arg0 : i32, i32
  }
  func.func @transform_2(%arg0: i32, %arg1: i32) -> (i32, i32) {
    %c0_i32 = arith.constant 0 : i32
    %c0_i32_0 = arith.constant 0 : i32
    %c0_i32_1 = arith.constant 0 : i32
    return %c0_i32, %c0_i32_0 : i32, i32
  }
  func.func @transform_3(%arg0: i32, %arg1: i32) -> (i32, i32) {
    %c0_i32 = arith.constant 0 : i32
    %c0_i32_0 = arith.constant 0 : i32
    return %c0_i32, %arg0 : i32, i32
  }
}

</mosaic_0001>

<bundles_post_ra>
// kernel: tpu_custom_call.1
= control target key start
LH: loop header
LB: loop body
LE: loop exit
PB: predicated region body
PF: predicated region fallthrough
CT: control target
= control target key end

     0   :  { %9 = vsyncpa [#allocation4], 0  ;;  %s617_s0 = inlined_call_operand.hbm [shape: bf16[8,256], index: 0, kind: input, shape index: {}]   ;;  %s618_s1 = inlined_call_operand.hbm [shape: bf16[256,256], index: 1, kind: input, shape index: {}]   ;;  %s619_s2 = inlined_call_operand.<no memory space> [shape: f32[1,1], index: 2, kind: input, shape index: {}]   ;;  %s620_s3 = inlined_call_operand.hbm [shape: f32[8,256], index: 3, kind: output, shape index: {}]  }
   0x1   :  { %10 = vsyncpa [#allocation7], 0 }
   0x2   :  { %11 = vsyncpa [#allocation5], 0  ;;  %s17_s14 = sshll.u32 %s617_s0, 4  ;;  %s580_s15 = smov [#allocation3]   ;;  %s18_s14 = int_to_ptr.hbm [resolvable:$true] %s17_s14 }
   0x3   :  { %s19_s16 = sshll.u32 %s580_s15, 4  ;;  %s27_s19 = sshll.u32 %s618_s1, 4  ;;  %s20_s16 = int_to_ptr.vmem [resolvable:$true] %s19_s16  ;;  %s28_s19 = int_to_ptr.hbm [resolvable:$true] %s27_s19 }
   0x4   :  { %22 = dma.hbm_to_vmem [thread:$0]  %s18_s14, 128, %s20_s16, [#allocation4]  }
   0x5   :  { %s581_s20 = smov [#allocation6]   ;;  %s582_s22 = smov 128  }
   0x6   :  { %s29_s21 = sshll.u32 %s581_s20, 4  ;;  %s583_s23 = smov 8   ;;  %s30_s21 = int_to_ptr.vmem [resolvable:$true] %s29_s21 }
   0x7   :  { %35 = dma.hbm_to_vmem [thread:$0]  %s28_s19, 4096, %s30_s21, [#allocation7], %s582_s22, %s582_s22, %s583_s23  }
   0x8   :  { %574 = dma.done.wait [#allocation4], 128  }
   0x9   :  { %575 = vsyncadd [#allocation4], 4294967168 }
   0xa   :  { %576 = dma.done.wait [#allocation7], 4096  }
   0xb   :  { %577 = vsyncadd [#allocation7], 4294963200  ;;  %v395_v0 = vld [vmem:[#allocation6 + $0x70] sm:$0xf]  ;;  %v480_v1 = vld [vmem:[#allocation6 + $0x74] sm:$0xf0] }
   0xc   :  { %v459_v2 = vld [vmem:[#allocation6 + $0xf0] sm:$0xf]  ;;  %v396_v3 = vor.u32 %v480_v1, %v395_v0  ;;  %v496_v4 = vld [vmem:[#allocation6 + $0xf4] sm:$0xf0]  ;;  %v479_v5 = vld [vmem:[#allocation6 + $0x74] sm:$0xf] }
   0xd   :  { %v397_v6 = vld [vmem:[#allocation6 + $0x78] sm:$0xf0]  ;;  %v460_v7 = vor.u32 %v496_v4, %v459_v2  ;;  %v495_v9 = vld [vmem:[#allocation6 + $0xf4] sm:$0xf]  ;;  %v387_v11 = vld [vmem:[#allocation6 + $0x60] sm:$0xf] }
   0xe   :  { %v400_v8 = vor.u32 %v479_v5, %v397_v6  ;;  %v461_v10 = vld [vmem:[#allocation6 + $0xf8] sm:$0xf0]  ;;  %261 = vmatpush.bf16.msra.mxu0 %v396_v3  ;;  %v478_v13 = vld [vmem:[#allocation6 + $0x64] sm:$0xf0]  ;;  %v451_v14 = vld [vmem:[#allocation6 + $0xe0] sm:$0xf] }
   0xf   :  { %v464_v12 = vor.u32 %v495_v9, %v461_v10  ;;  %v494_v15 = vld [vmem:[#allocation6 + $0xe4] sm:$0xf0]  ;;  %274 = vmatpush.bf16.msra.mxu1 %v460_v7  ;;  %v388_v16 = vor.u32 %v478_v13, %v387_v11  ;;  %v477_v18 = vld [vmem:[#allocation6 + $0x64] sm:$0xf]  ;;  %v389_v19 = vld [vmem:[#allocation6 + $0x68] sm:$0xf0] }
  0x10   :  { %287 = vmatpush.bf16.msra.mxu2 %v400_v8  ;;  %v452_v17 = vor.u32 %v494_v15, %v451_v14  ;;  %v493_v20 = vld [vmem:[#allocation6 + $0xe4] sm:$0xf]  ;;  %v392_v21 = vor.u32 %v477_v18, %v389_v19  ;;  %v453_v22 = vld [vmem:[#allocation6 + $0xe8] sm:$0xf0]  ;;  %v379_v23 = vld [vmem:[#allocation6 + $0x50] sm:$0xf] }
  0x11   :  { %300 = vmatpush.bf16.msra.mxu3 %v464_v12  ;;  %v476_v24 = vld [vmem:[#allocation6 + $0x54] sm:$0xf0]  ;;  %v456_v25 = vor.u32 %v493_v20, %v453_v22  ;;  %v443_v26 = vld [vmem:[#allocation6 + $0xd0] sm:$0xf]  ;;  %v475_v28 = vld [vmem:[#allocation6 + $0x54] sm:$0xf] }
  0x12   :  { %v492_v27 = vld [vmem:[#allocation6 + $0xd4] sm:$0xf0]  ;;  %262 = vmatpush.bf16.msra.mxu0 %v388_v16  ;;  %v380_v29 = vor.u32 %v476_v24, %v379_v23  ;;  %v381_v30 = vld [vmem:[#allocation6 + $0x58] sm:$0xf0]  ;;  %v491_v31 = vld [vmem:[#allocation6 + $0xd4] sm:$0xf] }
  0x13   :  { %v445_v32 = vld [vmem:[#allocation6 + $0xd8] sm:$0xf0]  ;;  %275 = vmatpush.bf16.msra.mxu1 %v452_v17  ;;  %v444_v33 = vor.u32 %v492_v27, %v443_v26  ;;  %v384_v34 = vor.u32 %v475_v28, %v381_v30  ;;  %v371_v35 = vld [vmem:[#allocation6 + $0x40] sm:$0xf]  ;;  %v474_v36 = vld [vmem:[#allocation6 + $0x44] sm:$0xf0] }
  0x14   :  { %288 = vmatpush.bf16.msra.mxu2 %v392_v21  ;;  %v435_v37 = vld [vmem:[#allocation6 + $0xc0] sm:$0xf]  ;;  %v448_v38 = vor.u32 %v491_v31, %v445_v32  ;;  %v490_v39 = vld [vmem:[#allocation6 + $0xc4] sm:$0xf0]  ;;  %v473_v40 = vld [vmem:[#allocation6 + $0x44] sm:$0xf]  ;;  %v372_v44 = vor.u32 %v474_v36, %v371_v35 }
  0x15   :  { %301 = vmatpush.bf16.msra.mxu3 %v456_v25  ;;  %v373_v41 = vld [vmem:[#allocation6 + $0x48] sm:$0xf0]  ;;  %v489_v42 = vld [vmem:[#allocation6 + $0xc4] sm:$0xf]  ;;  %v436_v45 = vor.u32 %v490_v39, %v435_v37  ;;  %v363_v47 = vld [vmem:[#allocation6 + $0x30] sm:$0xf] }
  0x16   :  { %v437_v43 = vld [vmem:[#allocation6 + $0xc8] sm:$0xf0]  ;;  %263 = vmatpush.bf16.msra.mxu0 %v380_v29  ;;  %v376_v46 = vor.u32 %v473_v40, %v373_v41  ;;  %v472_v48 = vld [vmem:[#allocation6 + $0x34] sm:$0xf0]  ;;  %v427_v49 = vld [vmem:[#allocation6 + $0xb0] sm:$0xf] }
  0x17   :  { %276 = vmatpush.bf16.msra.mxu1 %v444_v33  ;;  %v440_v50 = vor.u32 %v489_v42, %v437_v43  ;;  %v488_v51 = vld [vmem:[#allocation6 + $0xb4] sm:$0xf0]  ;;  %v471_v52 = vld [vmem:[#allocation6 + $0x34] sm:$0xf]  ;;  %v365_v53 = vld [vmem:[#allocation6 + $0x38] sm:$0xf0]  ;;  %v364_v56 = vor.u32 %v472_v48, %v363_v47 }
  0x18   :  { %289 = vmatpush.bf16.msra.mxu2 %v384_v34  ;;  %v487_v54 = vld [vmem:[#allocation6 + $0xb4] sm:$0xf]  ;;  %v429_v55 = vld [vmem:[#allocation6 + $0xb8] sm:$0xf0]  ;;  %v428_v57 = vor.u32 %v488_v51, %v427_v49  ;;  %v368_v58 = vor.u32 %v471_v52, %v365_v53  ;;  %v355_v59 = vld [vmem:[#allocation6 + $0x20] sm:$0xf] }
  0x19   :  { %302 = vmatpush.bf16.msra.mxu3 %v448_v38  ;;  %v470_v60 = vld [vmem:[#allocation6 + $0x24] sm:$0xf0]  ;;  %v419_v61 = vld [vmem:[#allocation6 + $0xa0] sm:$0xf]  ;;  %v432_v62 = vor.u32 %v487_v54, %v429_v55  ;;  %v469_v0 = vld [vmem:[#allocation6 + $0x24] sm:$0xf]  ;;  %v51_v38 = vstv %s619_s2 }
  0x1a   :  { %264 = vmatpush.bf16.msra.mxu0 %v372_v44  ;;  %v486_v63 = vld [vmem:[#allocation6 + $0xa4] sm:$0xf0]  ;;  %v357_v1 = vld [vmem:[#allocation6 + $0x28] sm:$0xf0]  ;;  %v485_v2 = vld [vmem:[#allocation6 + $0xa4] sm:$0xf]  ;;  %v356_v4 = vor.u32 %v470_v60, %v355_v59 }
  0x1b   :  { %277 = vmatpush.bf16.msra.mxu1 %v436_v45  ;;  %v421_v3 = vld [vmem:[#allocation6 + $0xa8] sm:$0xf0]  ;;  %v420_v5 = vor.u32 %v486_v63, %v419_v61  ;;  %v360_v6 = vor.u32 %v469_v0, %v357_v1  ;;  %v347_v7 = vld [vmem:[#allocation6 + $0x10] sm:$0xf]  ;;  %v468_v8 = vld [vmem:[#allocation6 + $0x14] sm:$0xf0] }
  0x1c   :  { %290 = vmatpush.bf16.msra.mxu2 %v376_v46  ;;  %v411_v9 = vld [vmem:[#allocation6 + $0x90] sm:$0xf]  ;;  %v424_v10 = vor.u32 %v485_v2, %v421_v3  ;;  %v484_v11 = vld [vmem:[#allocation6 + $0x94] sm:$0xf0]  ;;  %v467_v12 = vld [vmem:[#allocation6 + $0x14] sm:$0xf]  ;;  %v348_v16 = vor.u32 %v468_v8, %v347_v7 }
  0x1d   :  { %303 = vmatpush.bf16.msra.mxu3 %v440_v50  ;;  %v349_v13 = vld [vmem:[#allocation6 + $0x18] sm:$0xf0]  ;;  %v483_v14 = vld [vmem:[#allocation6 + $0x94] sm:$0xf]  ;;  %v412_v18 = vor.u32 %v484_v11, %v411_v9  ;;  %v339_v20 = vld [vmem:[#allocation6] sm:$0xf] }
  0x1e   :  { %265 = vmatpush.bf16.msra.mxu0 %v364_v56  ;;  %v413_v15 = vld [vmem:[#allocation6 + $0x98] sm:$0xf0]  ;;  %v352_v19 = vor.u32 %v467_v12, %v349_v13  ;;  %v466_v21 = vld [vmem:[#allocation6 + $0x4] sm:$0xf0]  ;;  %v403_v22 = vld [vmem:[#allocation6 + $0x80] sm:$0xf] }
  0x1f   :  { %278 = vmatpush.bf16.msra.mxu1 %v428_v57  ;;  %v59_v17 = vld [vmem:[#allocation3] sm:$0xff]  ;;  %v416_v23 = vor.u32 %v483_v14, %v413_v15  ;;  %v482_v24 = vld [vmem:[#allocation6 + $0x84] sm:$0xf0]  ;;  %v465_v25 = vld [vmem:[#allocation6 + $0x4] sm:$0xf]  ;;  %v340_v30 = vor.u32 %v466_v21, %v339_v20  ;;  %s584_s24 = smov [#allocation8]  }
  0x20   :  { %291 = vmatpush.bf16.msra.mxu2 %v368_v58  ;;  %v341_v26 = vld [vmem:[#allocation6 + $0x8] sm:$0xf0]  ;;  %v481_v27 = vld [vmem:[#allocation6 + $0x84] sm:$0xf]  ;;  %v95_v29 = vunpack.c.l.b16 %v59_v17  ;;  %v96_v31 = vunpack.c.h.b16 %v59_v17  ;;  %v404_v32 = vor.u32 %v482_v24, %v403_v22  ;;  %s322_s25 = sshll.u32 %s584_s24, 4  ;;  %s324_s28 = sshll.u32 %s620_s3, 4  ;;  %s323_s25 = int_to_ptr.vmem [resolvable:$true] %s322_s25  ;;  %s325_s28 = int_to_ptr.hbm [resolvable:$true] %s324_s28 }
  0x21   :  { %304 = vmatpush.bf16.msra.mxu3 %v432_v62  ;;  %v405_v28 = vld [vmem:[#allocation6 + $0x88] sm:$0xf0]  ;;  %v344_v33 = vor.u32 %v465_v25, %v341_v26 }
  0x22   :  { %266 = vmatpush.bf16.msra.mxu0 %v356_v4  ;;  %v408_v34 = vor.u32 %v481_v27, %v405_v28  ;;  %v97_v35 = vpack.c.b16 %v95_v29, %v95_v29  ;;  %v98_v36 = vpack.c.b16 %v96_v31, %v96_v31 }
  0x23   :  { %279 = vmatpush.bf16.msra.mxu1 %v420_v5 }
  0x24   :  { %292 = vmatpush.bf16.msra.mxu2 %v360_v6 }
  0x25   :  { %305 = vmatpush.bf16.msra.mxu3 %v424_v10 }
  0x26   :  { %267 = vmatpush.bf16.msra.mxu0 %v348_v16 }
  0x27   :  { %280 = vmatpush.bf16.msra.mxu1 %v412_v18 }
  0x28   :  { %293 = vmatpush.bf16.msra.mxu2 %v352_v19 }
  0x29   :  { %306 = vmatpush.bf16.msra.mxu3 %v416_v23 }
  0x2a   :  { %268 = vmatpush.bf16.msra.mxu0 %v340_v30 }
  0x2b   :  { %281 = vmatpush.bf16.msra.mxu1 %v404_v32 }
  0x2c   :  { %294 = vmatpush.bf16.msra.mxu2 %v344_v33 }
  0x2d   :  { %307 = vmatpush.bf16.msra.mxu3 %v408_v34  ;;  %269 = vmatmul.bf16.vlgmr.msra.gmra.mxu0 %v97_v35 }
  0x2e   :  { %282 = vmatmul.bf16.vlgmr.msra.gmra.mxu1 %v98_v36 }
  0x2f   :  { %295 = vmatmul.bf16.vlgmr.msra.gmra.mxu2 %v97_v35 }
  0x30   :  { %308 = vmatmul.bf16.vlgmr.msra.gmra.mxu3 %v98_v36 }
  0xaa   :  { %v270_v37 = vpop.f32.mrf.mxu0 }
  0xab   :  { %v283_v39 = vpop.f32.mrf.mxu1 }
  0xac   :  { %v284_v40 = vadd.f32 %v283_v39, %v270_v37 }
  0xae   :  { %v313_v41 = vadd.f32 %v284_v40, %v51_v38 }
  0xb0   :  { %315 = vst [vmem:[#allocation8] sm:$0xff] %v313_v41 }
  0xb2   :  { %v296_v42 = vpop.f32.mrf.mxu2  ;;  %v272_v44 = vpop.f32.mrf.mxu0 }
  0xb3   :  { %v309_v43 = vpop.f32.mrf.mxu3  ;;  %v285_v46 = vpop.f32.mrf.mxu1 }
  0xb4   :  { %v310_v45 = vadd.f32 %v309_v43, %v296_v42 }
  0xb6   :  { %v314_v47 = vadd.f32 %v310_v45, %v51_v38 }
  0xb8   :  { %316 = vst [vmem:[#allocation8 + $0x8] sm:$0xff] %v314_v47 }
  0xb9   :  { %327 = dma.vmem_to_hbm [thread:$0]  %s323_s25, 256, %s325_s28, [#allocation5]  }
  0xba   :  { %v298_v48 = vpop.f32.mrf.mxu2 }
  0xbb   :  { %v311_v49 = vpop.f32.mrf.mxu3 }
  0xbc   :  { %578 = dma.done.wait [#allocation5], 256  }
  0xbd   :  { %579 = vsyncadd [#allocation5], 4294967040 }
  0xbe   :  { %332 = vsyncpa [#allocation4], 1 }
  0xbf   :  { %333 = vsyncpa [#allocation7], 1 }
  0xc0   :  { %334 = vsyncpa [#allocation5], 1 }

</bundles_post_ra>
